<compile_context>
chip_gen: v6e
topology: v6e:2x2x1
jax: 0.10.0
libtpu: 0.0.40
codegen_flags: <defaults>
</compile_context>

<pallas_src>
import functools
import math

import jax
import jax.numpy as jnp
from jax.experimental import pallas as pl
from jax.experimental.pallas import tpu as pltpu

EPS = 1e-5
VMEM_LIMIT = 48 * 1024 * 1024   # safe on v5e/v6e (128 MiB) and v7x (64 MiB)
TM_TARGET = 256                 # row tile (multiple of 8)
TN_TARGET = 512                 # output-column tile (multiple of 128, MXU-friendly)


# ----------------------------- Pallas kernels -----------------------------

def _add_pos_kernel(x_ref, pos_ref, o_ref):
    # x_ref: (1, L, D), pos_ref: (L, D) -> broadcast add
    o_ref[...] = x_ref[...] + pos_ref[...]


def add_positional(x, pos):
    N, L, D = x.shape
    return pl.pallas_call(
        _add_pos_kernel,
        out_shape=jax.ShapeDtypeStruct((N, L, D), x.dtype),
        grid=(N,),
        in_specs=[pl.BlockSpec((1, L, D), lambda i: (i, 0, 0)),
                  pl.BlockSpec((L, D), lambda i: (0, 0))],
        out_specs=pl.BlockSpec((1, L, D), lambda i: (i, 0, 0)),
        compiler_params=pltpu.CompilerParams(dimension_semantics=("parallel",),
                                             vmem_limit_bytes=VMEM_LIMIT),
    )(x, pos)


def _fused_linear_kernel(*refs, use_ln, activation, add_residual):
    # ref layout: x, [gamma, beta], w, bias, [residual], out
    i = 0
    x_ref = refs[i]; i += 1
    if use_ln:
        g_ref, b_ref = refs[i], refs[i + 1]; i += 2
    w_ref, bias_ref = refs[i], refs[i + 1]; i += 2
    res_ref = None
    if add_residual:
        res_ref = refs[i]; i += 1
    o_ref = refs[i]

    x = x_ref[...].astype(jnp.float32)                      # (tm, K)
    if use_ln:
        mean = jnp.mean(x, axis=-1, keepdims=True)
        var = jnp.mean(jnp.square(x - mean), axis=-1, keepdims=True)
        x = (x - mean) * jax.lax.rsqrt(var + EPS)
        x = x * g_ref[...].astype(jnp.float32) + b_ref[...].astype(jnp.float32)

    acc = jnp.dot(x.astype(w_ref.dtype), w_ref[...],
                  preferred_element_type=jnp.float32)        # (tm, tn)
    acc = acc + bias_ref[...].astype(jnp.float32)
    if activation == "quick_gelu":
        # CLIP's QuickGELU: x * sigmoid(1.702 * x)
        acc = acc * jax.nn.sigmoid(1.702 * acc)
    if add_residual:
        acc = acc + res_ref[...].astype(jnp.float32)
    o_ref[...] = acc.astype(o_ref.dtype)


def fused_linear(x2d, w, b, *, gamma=None, beta=None, residual=None, activation=None):
    """out = [LN(x)] @ w + b  [quick_gelu]  [+ residual], tiled over (M, Nout)."""
    M, K = x2d.shape
    Nout = w.shape[1]

    tm = M if M <= TM_TARGET else TM_TARGET          # TM_TARGET is a multiple of 8
    tn = Nout if Nout <= TN_TARGET else TN_TARGET    # TN_TARGET is a multiple of 128
    grid = (pl.cdiv(M, tm), pl.cdiv(Nout, tn))

    use_ln = gamma is not None
    add_residual = residual is not None

    in_specs = [pl.BlockSpec((tm, K), lambda i, j: (i, 0))]
    args = [x2d]
    if use_ln:
        in_specs += [pl.BlockSpec((1, K), lambda i, j: (0, 0)),
                     pl.BlockSpec((1, K), lambda i, j: (0, 0))]
        args += [gamma.reshape(1, K), beta.reshape(1, K)]
    in_specs += [pl.BlockSpec((K, tn), lambda i, j: (0, j)),
                 pl.BlockSpec((1, tn), lambda i, j: (0, j))]
    args += [w, b.reshape(1, Nout)]
    if add_residual:
        in_specs += [pl.BlockSpec((tm, tn), lambda i, j: (i, j))]
        args += [residual]

    kern = functools.partial(_fused_linear_kernel, use_ln=use_ln,
                             activation=activation, add_residual=add_residual)
    return pl.pallas_call(
        kern,
        out_shape=jax.ShapeDtypeStruct((M, Nout), x2d.dtype),
        grid=grid,
        in_specs=in_specs,
        out_specs=pl.BlockSpec((tm, tn), lambda i, j: (i, j)),
        compiler_params=pltpu.CompilerParams(
            dimension_semantics=("parallel", "parallel"),
            vmem_limit_bytes=VMEM_LIMIT),
    )(*args)


def _attention_kernel(qkv_ref, o_ref, *, num_heads, scale):
    # One batch element per grid step, all heads computed in-kernel.
    qkv = qkv_ref[0].astype(jnp.float32)          # (L, 3D)
    L, D3 = qkv.shape
    D = D3 // 3
    Dh = D // num_heads

    # causal mask: built once per batch element, shared by all heads
    row = jax.lax.broadcasted_iota(jnp.int32, (L, L), 0)
    col = jax.lax.broadcasted_iota(jnp.int32, (L, L), 1)
    causal = col <= row

    outs = []
    for h in range(num_heads):                    # static unroll over heads
        q = qkv[:, h * Dh:(h + 1) * Dh]
        k = qkv[:, D + h * Dh:D + (h + 1) * Dh]
        v = qkv[:, 2 * D + h * Dh:2 * D + (h + 1) * Dh]
        # scores without an explicit k.T transpose
        s = jax.lax.dot_general(q, k, (((1,), (1,)), ((), ())),
                                preferred_element_type=jnp.float32) * scale
        s = jnp.where(causal, s, -1e30)
        s = s - jnp.max(s, axis=-1, keepdims=True)
        p = jnp.exp(s)
        p = p * pl.reciprocal(jnp.sum(p, axis=-1, keepdims=True), approx=True)
        outs.append(jnp.dot(p, v, preferred_element_type=jnp.float32))

    # single lane-dense store: heads concatenated along the last dim -> (L, D)
    o_ref[0] = jnp.concatenate(outs, axis=-1).astype(o_ref.dtype)


def mha_attention(qkv, *, num_heads):
    # qkv: (N, L, 3D) straight from the fused ln1->qkv matmul (no HBM transposes)
    N, L, D3 = qkv.shape
    D = D3 // 3
    Dh = D // num_heads
    scale = 1.0 / math.sqrt(Dh)
    kern = functools.partial(_attention_kernel, num_heads=num_heads, scale=scale)
    return pl.pallas_call(
        kern,
        out_shape=jax.ShapeDtypeStruct((N, L, D), qkv.dtype),
        grid=(N,),
        in_specs=[pl.BlockSpec((1, L, D3), lambda n: (n, 0, 0))],
        out_specs=pl.BlockSpec((1, L, D), lambda n: (n, 0, 0)),
        compiler_params=pltpu.CompilerParams(dimension_semantics=("parallel",),
                                             vmem_limit_bytes=VMEM_LIMIT),
    )(qkv)


# --------------------------- model (plain-JAX glue) ---------------------------

def residual_attention_block(x2d, p, num_heads, N, L, D):
    # x = x + out_proj(attn(ln_1(x)))        [LN fused into qkv, residual into out_proj]
    qkv = fused_linear(x2d, p["w_in"], p["b_in"],
                       gamma=p["ln1_g"], beta=p["ln1_b"])          # (N*L, 3D)
    attn = mha_attention(qkv.reshape(N, L, 3 * D), num_heads=num_heads)  # (N, L, D)
    x2d = fused_linear(attn.reshape(N * L, D), p["w_out"], p["b_out"],
                       residual=x2d)                               # (N*L, D)

    # x = x + mlp_proj(gelu(fc(ln_2(x))))    [LN fused into fc, residual into proj]
    h = fused_linear(x2d, p["w_fc"], p["b_fc"],
                     gamma=p["ln2_g"], beta=p["ln2_b"],
                     activation="quick_gelu")                      # (N*L, 4D)
    x2d = fused_linear(h, p["w_proj"], p["b_proj"], residual=x2d)  # (N*L, D)
    return x2d


def text_encoder_forward(prompts, tokenized_prompts, params, *, num_heads):
    # NOTE: at real CLIP sizes pad L (77) to a multiple of 8 at the model
    # boundary and mask padded keys in attention; the demo L is already aligned.
    N, L, D = prompts.shape
    x = add_positional(prompts, params["pos_emb"])        # x = prompts + pos_emb
    x = x.reshape(N * L, D)
    for p in params["blocks"]:                            # transformer (batch-first;
        x = residual_attention_block(x, p, num_heads, N, L, D)  # permute elided)

    # EOT gather first: LayerNorm is row-wise, so ln_final commutes with the
    # gather -> run fused LN + text_projection on only N rows.
    eot_idx = jnp.argmax(tokenized_prompts, axis=-1)      # (N,)
    x_eot = x.reshape(N, L, D)[jnp.arange(N), eot_idx]    # (N, D)
    E = params["text_proj"].shape[1]
    out = fused_linear(x_eot, params["text_proj"], jnp.zeros((E,), x_eot.dtype),
                       gamma=params["lnf_g"], beta=params["lnf_b"])
    return out                                            # (N, E)


def init_params(key, *, layers, width, seq_len, embed_dim):
    params = {"blocks": []}
    keys = jax.random.split(key, 2 + layers)
    f32 = jnp.float32
    params["pos_emb"] = 0.02 * jax.random.normal(keys[0], (seq_len, width), f32)
    params["text_proj"] = (width ** -0.5) * jax.random.normal(keys[1], (width, embed_dim), f32)
    params["lnf_g"] = jnp.ones((width,), f32)
    params["lnf_b"] = jnp.zeros((width,), f32)
    for l in range(layers):
        bk = jax.random.split(keys[2 + l], 4)
        params["blocks"].append({
            "ln1_g": jnp.ones((width,), f32), "ln1_b": jnp.zeros((width,), f32),
            "ln2_g": jnp.ones((width,), f32), "ln2_b": jnp.zeros((width,), f32),
            "w_in": 0.02 * jax.random.normal(bk[0], (width, 3 * width), f32),
            "b_in": jnp.zeros((3 * width,), f32),
            "w_out": 0.02 * jax.random.normal(bk[1], (width, width), f32),
            "b_out": jnp.zeros((width,), f32),
            "w_fc": 0.02 * jax.random.normal(bk[2], (width, 4 * width), f32),
            "b_fc": jnp.zeros((4 * width,), f32),
            "w_proj": 0.02 * jax.random.normal(bk[3], (4 * width, width), f32),
            "b_proj": jnp.zeros((width,), f32),
        })
    return params


if __name__ == "__main__":
    N, L, D, HEADS, EMBED_DIM, LAYERS = 2, 8, 32, 2, 16, 2
    key = jax.random.PRNGKey(0)
    k_prompts, k_tok, k_params = jax.random.split(key, 3)

    # prompts: continuous prompt embeddings (N, L, D); tokenized_prompts: token ids (N, L)
    prompts = jax.random.normal(k_prompts, (N, L, D), jnp.float32)
    tokenized_prompts = jax.random.randint(k_tok, (N, L), 0, 49408, dtype=jnp.int32)

    params = init_params(k_params, layers=LAYERS, width=D, seq_len=L, embed_dim=EMBED_DIM)

    fwd = jax.jit(functools.partial(text_encoder_forward, num_heads=HEADS))
    out = fwd(prompts, tokenized_prompts, params)
    out = jax.block_until_ready(out)
    assert out.shape == (N, EMBED_DIM) and out.dtype == jnp.float32
    assert bool(jnp.all(jnp.isfinite(out)))
    print("KERNEL_OK")
</pallas_src>

<mosaic_0001>
module attributes {stable_mosaic.version = 11 : i64} {
  func.func @_fused_linear_kernel(%arg0: i32, %arg1: i32, %arg2: memref<16x32xf32, #tpu.memory_space<vmem>>, %arg3: memref<1x32xf32, #tpu.memory_space<vmem>>, %arg4: memref<1x32xf32, #tpu.memory_space<vmem>>, %arg5: memref<32x96xf32, #tpu.memory_space<vmem>>, %arg6: memref<1x96xf32, #tpu.memory_space<vmem>>, %arg7: memref<16x96xf32, #tpu.memory_space<vmem>>) attributes {dimension_semantics = [#tpu.dimension_semantics<parallel>, #tpu.dimension_semantics<parallel>], iteration_bounds = array<i64: 1, 1>, scalar_prefetch = 0 : i64, scratch_operands = 0 : i64, tpu.core_type = #tpu.core_type<tc>, window_params = [{transform_indices = @transform_0, window_bounds = array<i64: 16, 32>}, {pipeline_mode = #tpu.pipeline_mode<synchronous>, transform_indices = @transform_1, window_bounds = array<i64: 1, 32>}, {pipeline_mode = #tpu.pipeline_mode<synchronous>, transform_indices = @transform_2, window_bounds = array<i64: 1, 32>}, {transform_indices = @transform_3, window_bounds = array<i64: 32, 96>}, {transform_indices = @transform_4, window_bounds = array<i64: 1, 96>}, {transform_indices = @transform_5, window_bounds = array<i64: 16, 96>}]} {
    %c0 = arith.constant 0 : index
    %c0_0 = arith.constant 0 : index
    %0 = vector.load %arg2[%c0, %c0_0] : memref<16x32xf32, #tpu.memory_space<vmem>>, vector<16x32xf32>
    %cst = arith.constant dense<0.000000e+00> : vector<16xf32>
    %1 = vector.multi_reduction <add>, %0, %cst [1] : vector<16x32xf32> to vector<16xf32>
    %2 = vector.shape_cast %1 : vector<16xf32> to vector<16x1xf32>
    %cst_1 = arith.constant 3.200000e+01 : f32
    %3 = vector.broadcast %cst_1 : f32 to vector<16x1xf32>
    %4 = arith.divf %2, %3 : vector<16x1xf32>
    %5 = vector.broadcast %4 : vector<16x1xf32> to vector<16x32xf32>
    %6 = arith.subf %0, %5 : vector<16x32xf32>
    %7 = arith.mulf %6, %6 : vector<16x32xf32>
    %cst_2 = arith.constant dense<0.000000e+00> : vector<16xf32>
    %8 = vector.multi_reduction <add>, %7, %cst_2 [1] : vector<16x32xf32> to vector<16xf32>
    %9 = vector.shape_cast %8 : vector<16xf32> to vector<16x1xf32>
    %cst_3 = arith.constant 3.200000e+01 : f32
    %10 = vector.broadcast %cst_3 : f32 to vector<16x1xf32>
    %11 = arith.divf %9, %10 : vector<16x1xf32>
    %12 = vector.broadcast %4 : vector<16x1xf32> to vector<16x32xf32>
    %13 = arith.subf %0, %12 : vector<16x32xf32>
    %cst_4 = arith.constant 9.99999974E-6 : f32
    %14 = vector.broadcast %cst_4 : f32 to vector<16x1xf32>
    %15 = arith.addf %11, %14 : vector<16x1xf32>
    %16 = math.rsqrt %15 : vector<16x1xf32>
    %17 = vector.broadcast %16 : vector<16x1xf32> to vector<16x32xf32>
    %18 = arith.mulf %13, %17 : vector<16x32xf32>
    %c0_5 = arith.constant 0 : index
    %c0_6 = arith.constant 0 : index
    %19 = vector.load %arg3[%c0_5, %c0_6] : memref<1x32xf32, #tpu.memory_space<vmem>>, vector<1x32xf32>
    %20 = vector.broadcast %19 : vector<1x32xf32> to vector<16x32xf32>
    %21 = arith.mulf %18, %20 : vector<16x32xf32>
    %c0_7 = arith.constant 0 : index
    %c0_8 = arith.constant 0 : index
    %22 = vector.load %arg4[%c0_7, %c0_8] : memref<1x32xf32, #tpu.memory_space<vmem>>, vector<1x32xf32>
    %23 = vector.broadcast %22 : vector<1x32xf32> to vector<16x32xf32>
    %24 = arith.addf %21, %23 : vector<16x32xf32>
    %c0_9 = arith.constant 0 : index
    %c0_10 = arith.constant 0 : index
    %25 = vector.load %arg5[%c0_9, %c0_10] : memref<32x96xf32, #tpu.memory_space<vmem>>, vector<32x96xf32>
    %cst_11 = arith.constant dense<0.000000e+00> : vector<16x96xf32>
    %26 = tpu.matmul %24, %25, %cst_11 {dimension_numbers = #tpu.dot_dimension_numbers<[1], [0], [0], [1], [0, 0, 1, 1], [], []>} : vector<16x32xf32>, vector<32x96xf32>, vector<16x96xf32> -> vector<16x96xf32>
    %c0_12 = arith.constant 0 : index
    %c0_13 = arith.constant 0 : index
    %27 = vector.load %arg6[%c0_12, %c0_13] : memref<1x96xf32, #tpu.memory_space<vmem>>, vector<1x96xf32>
    %28 = vector.broadcast %27 : vector<1x96xf32> to vector<16x96xf32>
    %29 = arith.addf %26, %28 : vector<16x96xf32>
    %c0_14 = arith.constant 0 : index
    %c0_15 = arith.constant 0 : index
    %30 = vector.load %arg7[%c0_14, %c0_15] : memref<16x96xf32, #tpu.memory_space<vmem>>, vector<16x96xf32>
    tpu.vector_store %arg7[%c0_14, %c0_15], %29 {strides = array<i32>} : memref<16x96xf32, #tpu.memory_space<vmem>>, vector<16x96xf32>,
    return
  }
  func.func @transform_0(%arg0: i32, %arg1: i32) -> (i32, i32) {
    %c0_i32 = arith.constant 0 : i32
    %c0_i32_0 = arith.constant 0 : i32
    return %arg0, %c0_i32 : i32, i32
  }
  func.func @transform_1(%arg0: i32, %arg1: i32) -> (i32, i32) {
    %c0_i32 = arith.constant 0 : i32
    %c0_i32_0 = arith.constant 0 : i32
    %c0_i32_1 = arith.constant 0 : i32
    return %c0_i32, %c0_i32_0 : i32, i32
  }
  func.func @transform_2(%arg0: i32, %arg1: i32) -> (i32, i32) {
    %c0_i32 = arith.constant 0 : i32
    %c0_i32_0 = arith.constant 0 : i32
    %c0_i32_1 = arith.constant 0 : i32
    return %c0_i32, %c0_i32_0 : i32, i32
  }
  func.func @transform_3(%arg0: i32, %arg1: i32) -> (i32, i32) {
    %c0_i32 = arith.constant 0 : i32
    %c0_i32_0 = arith.constant 0 : i32
    return %c0_i32, %arg1 : i32, i32
  }
  func.func @transform_4(%arg0: i32, %arg1: i32) -> (i32, i32) {
    %c0_i32 = arith.constant 0 : i32
    %c0_i32_0 = arith.constant 0 : i32
    return %c0_i32, %arg1 : i32, i32
  }
  func.func @transform_5(%arg0: i32, %arg1: i32) -> (i32, i32) {
    %c0_i32 = arith.constant 0 : i32
    return %arg0, %arg1 : i32, i32
  }
}

module attributes {stable_mosaic.version = 11 : i64} {
  func.func @_attention_kernel(%arg0: i32, %arg1: memref<1x8x96xf32, #tpu.memory_space<vmem>>, %arg2: memref<1x8x32xf32, #tpu.memory_space<vmem>>) attributes {dimension_semantics = [#tpu.dimension_semantics<parallel>], iteration_bounds = array<i64: 2>, scalar_prefetch = 0 : i64, scratch_operands = 0 : i64, tpu.core_type = #tpu.core_type<tc>, window_params = [{transform_indices = @transform_0, window_bounds = array<i64: 1, 8, 96>}, {transform_indices = @transform_1, window_bounds = array<i64: 1, 8, 32>}]} {
    %c0 = arith.constant 0 : index
    %c0_0 = arith.constant 0 : index
    %c0_1 = arith.constant 0 : index
    %0 = vector.load %arg1[%c0, %c0_0, %c0_1] : memref<1x8x96xf32, #tpu.memory_space<vmem>>, vector<1x8x96xf32>
    %1 = vector.shape_cast %0 : vector<1x8x96xf32> to vector<8x96xf32>
    %2 = tpu.iota {dimensions = array<i32: 0>} : vector<8x8xi32>
    %3 = tpu.iota {dimensions = array<i32: 1>} : vector<8x8xi32>
    %4 = arith.cmpi sle, %3, %2 : vector<8x8xi32>
    %5 = vector.extract_strided_slice %1 {offsets = [0, 0], sizes = [8, 16], strides = [1, 1]} : vector<8x96xf32> to vector<8x16xf32>
    %6 = vector.extract_strided_slice %1 {offsets = [0, 32], sizes = [8, 16], strides = [1, 1]} : vector<8x96xf32> to vector<8x16xf32>
    %7 = vector.extract_strided_slice %1 {offsets = [0, 64], sizes = [8, 16], strides = [1, 1]} : vector<8x96xf32> to vector<8x16xf32>
    %cst = arith.constant dense<0.000000e+00> : vector<8x8xf32>
    %8 = tpu.matmul %5, %6, %cst {dimension_numbers = #tpu.dot_dimension_numbers<[1], [1], [0], [0], [0, 0, 1, 0], [], []>} : vector<8x16xf32>, vector<8x16xf32>, vector<8x8xf32> -> vector<8x8xf32>
    %cst_2 = arith.constant 2.500000e-01 : f32
    %9 = vector.broadcast %cst_2 : f32 to vector<8x8xf32>
    %10 = arith.mulf %8, %9 : vector<8x8xf32>
    %cst_3 = arith.constant -1.000000e+30 : f32
    %11 = vector.broadcast %cst_3 : f32 to vector<8x8xf32>
    %12 = arith.select %4, %10, %11 : vector<8x8xi1>, vector<8x8xf32>
    %cst_4 = arith.constant dense<0xFF800000> : vector<8xf32>
    %13 = vector.multi_reduction <maximumf>, %12, %cst_4 [1] : vector<8x8xf32> to vector<8xf32>
    %14 = vector.shape_cast %13 : vector<8xf32> to vector<8x1xf32>
    %15 = vector.broadcast %14 : vector<8x1xf32> to vector<8x8xf32>
    %16 = arith.subf %12, %15 : vector<8x8xf32>
    %17 = math.exp %16 : vector<8x8xf32>
    %cst_5 = arith.constant dense<0.000000e+00> : vector<8xf32>
    %18 = vector.multi_reduction <add>, %17, %cst_5 [1] : vector<8x8xf32> to vector<8xf32>
    %19 = vector.shape_cast %18 : vector<8xf32> to vector<8x1xf32>
    %20 = tpu.reciprocal %19 {approx = true} : vector<8x1xf32> -> vector<8x1xf32>
    %21 = vector.broadcast %20 : vector<8x1xf32> to vector<8x8xf32>
    %22 = arith.mulf %17, %21 : vector<8x8xf32>
    %cst_6 = arith.constant dense<0.000000e+00> : vector<8x16xf32>
    %23 = tpu.matmul %22, %7, %cst_6 {dimension_numbers = #tpu.dot_dimension_numbers<[1], [0], [0], [1], [0, 0, 1, 1], [], []>} : vector<8x8xf32>, vector<8x16xf32>, vector<8x16xf32> -> vector<8x16xf32>
    %24 = vector.extract_strided_slice %1 {offsets = [0, 16], sizes = [8, 16], strides = [1, 1]} : vector<8x96xf32> to vector<8x16xf32>
    %25 = vector.extract_strided_slice %1 {offsets = [0, 48], sizes = [8, 16], strides = [1, 1]} : vector<8x96xf32> to vector<8x16xf32>
    %26 = vector.extract_strided_slice %1 {offsets = [0, 80], sizes = [8, 16], strides = [1, 1]} : vector<8x96xf32> to vector<8x16xf32>
    %cst_7 = arith.constant dense<0.000000e+00> : vector<8x8xf32>
    %27 = tpu.matmul %24, %25, %cst_7 {dimension_numbers = #tpu.dot_dimension_numbers<[1], [1], [0], [0], [0, 0, 1, 0], [], []>} : vector<8x16xf32>, vector<8x16xf32>, vector<8x8xf32> -> vector<8x8xf32>
    %cst_8 = arith.constant 2.500000e-01 : f32
    %28 = vector.broadcast %cst_8 : f32 to vector<8x8xf32>
    %29 = arith.mulf %27, %28 : vector<8x8xf32>
    %cst_9 = arith.constant -1.000000e+30 : f32
    %30 = vector.broadcast %cst_9 : f32 to vector<8x8xf32>
    %31 = arith.select %4, %29, %30 : vector<8x8xi1>, vector<8x8xf32>
    %cst_10 = arith.constant dense<0xFF800000> : vector<8xf32>
    %32 = vector.multi_reduction <maximumf>, %31, %cst_10 [1] : vector<8x8xf32> to vector<8xf32>
    %33 = vector.shape_cast %32 : vector<8xf32> to vector<8x1xf32>
    %34 = vector.broadcast %33 : vector<8x1xf32> to vector<8x8xf32>
    %35 = arith.subf %31, %34 : vector<8x8xf32>
    %36 = math.exp %35 : vector<8x8xf32>
    %cst_11 = arith.constant dense<0.000000e+00> : vector<8xf32>
    %37 = vector.multi_reduction <add>, %36, %cst_11 [1] : vector<8x8xf32> to vector<8xf32>
    %38 = vector.shape_cast %37 : vector<8xf32> to vector<8x1xf32>
    %39 = tpu.reciprocal %38 {approx = true} : vector<8x1xf32> -> vector<8x1xf32>
    %40 = vector.broadcast %39 : vector<8x1xf32> to vector<8x8xf32>
    %41 = arith.mulf %36, %40 : vector<8x8xf32>
    %cst_12 = arith.constant dense<0.000000e+00> : vector<8x16xf32>
    %42 = tpu.matmul %41, %26, %cst_12 {dimension_numbers = #tpu.dot_dimension_numbers<[1], [0], [0], [1], [0, 0, 1, 1], [], []>} : vector<8x8xf32>, vector<8x16xf32>, vector<8x16xf32> -> vector<8x16xf32>
    %43 = tpu.concatenate %23, %42 in 1 : vector<8x16xf32>, vector<8x16xf32> -> vector<8x32xf32>
    %c0_13 = arith.constant 0 : index
    %c0_14 = arith.constant 0 : index
    %c0_15 = arith.constant 0 : index
    %44 = vector.load %arg2[%c0_13, %c0_14, %c0_15] : memref<1x8x32xf32, #tpu.memory_space<vmem>>, vector<1x8x32xf32>
    %45 = vector.shape_cast %44 : vector<1x8x32xf32> to vector<8x32xf32>
    %46 = vector.shape_cast %43 : vector<8x32xf32> to vector<1x8x32xf32>
    tpu.vector_store %arg2[%c0_13, %c0_14, %c0_15], %46 {strides = array<i32>} : memref<1x8x32xf32, #tpu.memory_space<vmem>>, vector<1x8x32xf32>,
    return
  }
  func.func @transform_0(%arg0: i32) -> (i32, i32, i32) {
    %c0_i32 = arith.constant 0 : i32
    %c0_i32_0 = arith.constant 0 : i32
    %c0_i32_1 = arith.constant 0 : i32
    return %arg0, %c0_i32, %c0_i32_0 : i32, i32, i32
  }
  func.func @transform_1(%arg0: i32) -> (i32, i32, i32) {
    %c0_i32 = arith.constant 0 : i32
    %c0_i32_0 = arith.constant 0 : i32
    %c0_i32_1 = arith.constant 0 : i32
    return %arg0, %c0_i32, %c0_i32_0 : i32, i32, i32
  }
}

module attributes {stable_mosaic.version = 11 : i64} {
  func.func @_add_pos_kernel(%arg0: i32, %arg1: memref<1x8x32xf32, #tpu.memory_space<vmem>>, %arg2: memref<8x32xf32, #tpu.memory_space<vmem>>, %arg3: memref<1x8x32xf32, #tpu.memory_space<vmem>>) attributes {dimension_semantics = [#tpu.dimension_semantics<parallel>], iteration_bounds = array<i64: 2>, scalar_prefetch = 0 : i64, scratch_operands = 0 : i64, tpu.core_type = #tpu.core_type<tc>, window_params = [{transform_indices = @transform_0, window_bounds = array<i64: 1, 8, 32>}, {pipeline_mode = #tpu.pipeline_mode<synchronous>, transform_indices = @transform_1, window_bounds = array<i64: 8, 32>}, {transform_indices = @transform_2, window_bounds = array<i64: 1, 8, 32>}]} {
    %c0 = arith.constant 0 : index
    %c0_0 = arith.constant 0 : index
    %c0_1 = arith.constant 0 : index
    %0 = vector.load %arg1[%c0, %c0_0, %c0_1] : memref<1x8x32xf32, #tpu.memory_space<vmem>>, vector<1x8x32xf32>
    %c0_2 = arith.constant 0 : index
    %c0_3 = arith.constant 0 : index
    %1 = vector.load %arg2[%c0_2, %c0_3] : memref<8x32xf32, #tpu.memory_space<vmem>>, vector<8x32xf32>
    %2 = vector.shape_cast %1 : vector<8x32xf32> to vector<1x8x32xf32>
    %3 = arith.addf %0, %2 : vector<1x8x32xf32>
    %c0_4 = arith.constant 0 : index
    %c0_5 = arith.constant 0 : index
    %c0_6 = arith.constant 0 : index
    %4 = vector.load %arg3[%c0_4, %c0_5, %c0_6] : memref<1x8x32xf32, #tpu.memory_space<vmem>>, vector<1x8x32xf32>
    tpu.vector_store %arg3[%c0_4, %c0_5, %c0_6], %3 {strides = array<i32>} : memref<1x8x32xf32, #tpu.memory_space<vmem>>, vector<1x8x32xf32>,
    return
  }
  func.func @transform_0(%arg0: i32) -> (i32, i32, i32) {
    %c0_i32 = arith.constant 0 : i32
    %c0_i32_0 = arith.constant 0 : i32
    %c0_i32_1 = arith.constant 0 : i32
    return %arg0, %c0_i32, %c0_i32_0 : i32, i32, i32
  }
  func.func @transform_1(%arg0: i32) -> (i32, i32) {
    %c0_i32 = arith.constant 0 : i32
    %c0_i32_0 = arith.constant 0 : i32
    %c0_i32_1 = arith.constant 0 : i32
    return %c0_i32, %c0_i32_0 : i32, i32
  }
  func.func @transform_2(%arg0: i32) -> (i32, i32, i32) {
    %c0_i32 = arith.constant 0 : i32
    %c0_i32_0 = arith.constant 0 : i32
    %c0_i32_1 = arith.constant 0 : i32
    return %arg0, %c0_i32, %c0_i32_0 : i32, i32, i32
  }
}

module attributes {stable_mosaic.version = 11 : i64} {
  func.func @_fused_linear_kernel(%arg0: i32, %arg1: i32, %arg2: memref<16x32xf32, #tpu.memory_space<vmem>>, %arg3: memref<32x32xf32, #tpu.memory_space<vmem>>, %arg4: memref<1x32xf32, #tpu.memory_space<vmem>>, %arg5: memref<16x32xf32, #tpu.memory_space<vmem>>, %arg6: memref<16x32xf32, #tpu.memory_space<vmem>>) attributes {dimension_semantics = [#tpu.dimension_semantics<parallel>, #tpu.dimension_semantics<parallel>], iteration_bounds = array<i64: 1, 1>, scalar_prefetch = 0 : i64, scratch_operands = 0 : i64, tpu.core_type = #tpu.core_type<tc>, window_params = [{transform_indices = @transform_0, window_bounds = array<i64: 16, 32>}, {transform_indices = @transform_1, window_bounds = array<i64: 32, 32>}, {transform_indices = @transform_2, window_bounds = array<i64: 1, 32>}, {transform_indices = @transform_3, window_bounds = array<i64: 16, 32>}, {transform_indices = @transform_4, window_bounds = array<i64: 16, 32>}]} {
    %c0 = arith.constant 0 : index
    %c0_0 = arith.constant 0 : index
    %0 = vector.load %arg2[%c0, %c0_0] : memref<16x32xf32, #tpu.memory_space<vmem>>, vector<16x32xf32>
    %c0_1 = arith.constant 0 : index
    %c0_2 = arith.constant 0 : index
    %1 = vector.load %arg3[%c0_1, %c0_2] : memref<32x32xf32, #tpu.memory_space<vmem>>, vector<32x32xf32>
    %cst = arith.constant dense<0.000000e+00> : vector<16x32xf32>
    %2 = tpu.matmul %0, %1, %cst {dimension_numbers = #tpu.dot_dimension_numbers<[1], [0], [0], [1], [0, 0, 1, 1], [], []>} : vector<16x32xf32>, vector<32x32xf32>, vector<16x32xf32> -> vector<16x32xf32>
    %c0_3 = arith.constant 0 : index
    %c0_4 = arith.constant 0 : index
    %3 = vector.load %arg4[%c0_3, %c0_4] : memref<1x32xf32, #tpu.memory_space<vmem>>, vector<1x32xf32>
    %4 = vector.broadcast %3 : vector<1x32xf32> to vector<16x32xf32>
    %5 = arith.addf %2, %4 : vector<16x32xf32>
    %c0_5 = arith.constant 0 : index
    %c0_6 = arith.constant 0 : index
    %6 = vector.load %arg5[%c0_5, %c0_6] : memref<16x32xf32, #tpu.memory_space<vmem>>, vector<16x32xf32>
    %7 = arith.addf %5, %6 : vector<16x32xf32>
    %c0_7 = arith.constant 0 : index
    %c0_8 = arith.constant 0 : index
    %8 = vector.load %arg6[%c0_7, %c0_8] : memref<16x32xf32, #tpu.memory_space<vmem>>, vector<16x32xf32>
    tpu.vector_store %arg6[%c0_7, %c0_8], %7 {strides = array<i32>} : memref<16x32xf32, #tpu.memory_space<vmem>>, vector<16x32xf32>,
    return
  }
  func.func @transform_0(%arg0: i32, %arg1: i32) -> (i32, i32) {
    %c0_i32 = arith.constant 0 : i32
    %c0_i32_0 = arith.constant 0 : i32
    return %arg0, %c0_i32 : i32, i32
  }
  func.func @transform_1(%arg0: i32, %arg1: i32) -> (i32, i32) {
    %c0_i32 = arith.constant 0 : i32
    %c0_i32_0 = arith.constant 0 : i32
    return %c0_i32, %arg1 : i32, i32
  }
  func.func @transform_2(%arg0: i32, %arg1: i32) -> (i32, i32) {
    %c0_i32 = arith.constant 0 : i32
    %c0_i32_0 = arith.constant 0 : i32
    return %c0_i32, %arg1 : i32, i32
  }
  func.func @transform_3(%arg0: i32, %arg1: i32) -> (i32, i32) {
    %c0_i32 = arith.constant 0 : i32
    return %arg0, %arg1 : i32, i32
  }
  func.func @transform_4(%arg0: i32, %arg1: i32) -> (i32, i32) {
    %c0_i32 = arith.constant 0 : i32
    return %arg0, %arg1 : i32, i32
  }
}

module attributes {stable_mosaic.version = 11 : i64} {
  func.func @_fused_linear_kernel(%arg0: i32, %arg1: i32, %arg2: memref<16x128xf32, #tpu.memory_space<vmem>>, %arg3: memref<128x32xf32, #tpu.memory_space<vmem>>, %arg4: memref<1x32xf32, #tpu.memory_space<vmem>>, %arg5: memref<16x32xf32, #tpu.memory_space<vmem>>, %arg6: memref<16x32xf32, #tpu.memory_space<vmem>>) attributes {dimension_semantics = [#tpu.dimension_semantics<parallel>, #tpu.dimension_semantics<parallel>], iteration_bounds = array<i64: 1, 1>, scalar_prefetch = 0 : i64, scratch_operands = 0 : i64, tpu.core_type = #tpu.core_type<tc>, window_params = [{transform_indices = @transform_0, window_bounds = array<i64: 16, 128>}, {transform_indices = @transform_1, window_bounds = array<i64: 128, 32>}, {transform_indices = @transform_2, window_bounds = array<i64: 1, 32>}, {transform_indices = @transform_3, window_bounds = array<i64: 16, 32>}, {transform_indices = @transform_4, window_bounds = array<i64: 16, 32>}]} {
    %c0 = arith.constant 0 : index
    %c0_0 = arith.constant 0 : index
    %0 = vector.load %arg2[%c0, %c0_0] : memref<16x128xf32, #tpu.memory_space<vmem>>, vector<16x128xf32>
    %c0_1 = arith.constant 0 : index
    %c0_2 = arith.constant 0 : index
    %1 = vector.load %arg3[%c0_1, %c0_2] : memref<128x32xf32, #tpu.memory_space<vmem>>, vector<128x32xf32>
    %cst = arith.constant dense<0.000000e+00> : vector<16x32xf32>
    %2 = tpu.matmul %0, %1, %cst {dimension_numbers = #tpu.dot_dimension_numbers<[1], [0], [0], [1], [0, 0, 1, 1], [], []>} : vector<16x128xf32>, vector<128x32xf32>, vector<16x32xf32> -> vector<16x32xf32>
    %c0_3 = arith.constant 0 : index
    %c0_4 = arith.constant 0 : index
    %3 = vector.load %arg4[%c0_3, %c0_4] : memref<1x32xf32, #tpu.memory_space<vmem>>, vector<1x32xf32>
    %4 = vector.broadcast %3 : vector<1x32xf32> to vector<16x32xf32>
    %5 = arith.addf %2, %4 : vector<16x32xf32>
    %c0_5 = arith.constant 0 : index
    %c0_6 = arith.constant 0 : index
    %6 = vector.load %arg5[%c0_5, %c0_6] : memref<16x32xf32, #tpu.memory_space<vmem>>, vector<16x32xf32>
    %7 = arith.addf %5, %6 : vector<16x32xf32>
    %c0_7 = arith.constant 0 : index
    %c0_8 = arith.constant 0 : index
    %8 = vector.load %arg6[%c0_7, %c0_8] : memref<16x32xf32, #tpu.memory_space<vmem>>, vector<16x32xf32>
    tpu.vector_store %arg6[%c0_7, %c0_8], %7 {strides = array<i32>} : memref<16x32xf32, #tpu.memory_space<vmem>>, vector<16x32xf32>,
    return
  }
  func.func @transform_0(%arg0: i32, %arg1: i32) -> (i32, i32) {
    %c0_i32 = arith.constant 0 : i32
    %c0_i32_0 = arith.constant 0 : i32
    return %arg0, %c0_i32 : i32, i32
  }
  func.func @transform_1(%arg0: i32, %arg1: i32) -> (i32, i32) {
    %c0_i32 = arith.constant 0 : i32
    %c0_i32_0 = arith.constant 0 : i32
    return %c0_i32, %arg1 : i32, i32
  }
  func.func @transform_2(%arg0: i32, %arg1: i32) -> (i32, i32) {
    %c0_i32 = arith.constant 0 : i32
    %c0_i32_0 = arith.constant 0 : i32
    return %c0_i32, %arg1 : i32, i32
  }
  func.func @transform_3(%arg0: i32, %arg1: i32) -> (i32, i32) {
    %c0_i32 = arith.constant 0 : i32
    return %arg0, %arg1 : i32, i32
  }
  func.func @transform_4(%arg0: i32, %arg1: i32) -> (i32, i32) {
    %c0_i32 = arith.constant 0 : i32
    return %arg0, %arg1 : i32, i32
  }
}

module attributes {stable_mosaic.version = 11 : i64} {
  func.func @_fused_linear_kernel(%arg0: i32, %arg1: i32, %arg2: memref<16x32xf32, #tpu.memory_space<vmem>>, %arg3: memref<1x32xf32, #tpu.memory_space<vmem>>, %arg4: memref<1x32xf32, #tpu.memory_space<vmem>>, %arg5: memref<32x128xf32, #tpu.memory_space<vmem>>, %arg6: memref<1x128xf32, #tpu.memory_space<vmem>>, %arg7: memref<16x128xf32, #tpu.memory_space<vmem>>) attributes {dimension_semantics = [#tpu.dimension_semantics<parallel>, #tpu.dimension_semantics<parallel>], iteration_bounds = array<i64: 1, 1>, scalar_prefetch = 0 : i64, scratch_operands = 0 : i64, tpu.core_type = #tpu.core_type<tc>, window_params = [{transform_indices = @transform_0, window_bounds = array<i64: 16, 32>}, {pipeline_mode = #tpu.pipeline_mode<synchronous>, transform_indices = @transform_1, window_bounds = array<i64: 1, 32>}, {pipeline_mode = #tpu.pipeline_mode<synchronous>, transform_indices = @transform_2, window_bounds = array<i64: 1, 32>}, {transform_indices = @transform_3, window_bounds = array<i64: 32, 128>}, {transform_indices = @transform_4, window_bounds = array<i64: 1, 128>}, {transform_indices = @transform_5, window_bounds = array<i64: 16, 128>}]} {
    %c0 = arith.constant 0 : index
    %c0_0 = arith.constant 0 : index
    %0 = vector.load %arg2[%c0, %c0_0] : memref<16x32xf32, #tpu.memory_space<vmem>>, vector<16x32xf32>
    %cst = arith.constant dense<0.000000e+00> : vector<16xf32>
    %1 = vector.multi_reduction <add>, %0, %cst [1] : vector<16x32xf32> to vector<16xf32>
    %2 = vector.shape_cast %1 : vector<16xf32> to vector<16x1xf32>
    %cst_1 = arith.constant 3.200000e+01 : f32
    %3 = vector.broadcast %cst_1 : f32 to vector<16x1xf32>
    %4 = arith.divf %2, %3 : vector<16x1xf32>
    %5 = vector.broadcast %4 : vector<16x1xf32> to vector<16x32xf32>
    %6 = arith.subf %0, %5 : vector<16x32xf32>
    %7 = arith.mulf %6, %6 : vector<16x32xf32>
    %cst_2 = arith.constant dense<0.000000e+00> : vector<16xf32>
    %8 = vector.multi_reduction <add>, %7, %cst_2 [1] : vector<16x32xf32> to vector<16xf32>
    %9 = vector.shape_cast %8 : vector<16xf32> to vector<16x1xf32>
    %cst_3 = arith.constant 3.200000e+01 : f32
    %10 = vector.broadcast %cst_3 : f32 to vector<16x1xf32>
    %11 = arith.divf %9, %10 : vector<16x1xf32>
    %12 = vector.broadcast %4 : vector<16x1xf32> to vector<16x32xf32>
    %13 = arith.subf %0, %12 : vector<16x32xf32>
    %cst_4 = arith.constant 9.99999974E-6 : f32
    %14 = vector.broadcast %cst_4 : f32 to vector<16x1xf32>
    %15 = arith.addf %11, %14 : vector<16x1xf32>
    %16 = math.rsqrt %15 : vector<16x1xf32>
    %17 = vector.broadcast %16 : vector<16x1xf32> to vector<16x32xf32>
    %18 = arith.mulf %13, %17 : vector<16x32xf32>
    %c0_5 = arith.constant 0 : index
    %c0_6 = arith.constant 0 : index
    %19 = vector.load %arg3[%c0_5, %c0_6] : memref<1x32xf32, #tpu.memory_space<vmem>>, vector<1x32xf32>
    %20 = vector.broadcast %19 : vector<1x32xf32> to vector<16x32xf32>
    %21 = arith.mulf %18, %20 : vector<16x32xf32>
    %c0_7 = arith.constant 0 : index
    %c0_8 = arith.constant 0 : index
    %22 = vector.load %arg4[%c0_7, %c0_8] : memref<1x32xf32, #tpu.memory_space<vmem>>, vector<1x32xf32>
    %23 = vector.broadcast %22 : vector<1x32xf32> to vector<16x32xf32>
    %24 = arith.addf %21, %23 : vector<16x32xf32>
    %c0_9 = arith.constant 0 : index
    %c0_10 = arith.constant 0 : index
    %25 = vector.load %arg5[%c0_9, %c0_10] : memref<32x128xf32, #tpu.memory_space<vmem>>, vector<32x128xf32>
    %cst_11 = arith.constant dense<0.000000e+00> : vector<16x128xf32>
    %26 = tpu.matmul %24, %25, %cst_11 {dimension_numbers = #tpu.dot_dimension_numbers<[1], [0], [0], [1], [0, 0, 1, 1], [], []>} : vector<16x32xf32>, vector<32x128xf32>, vector<16x128xf32> -> vector<16x128xf32>
    %c0_12 = arith.constant 0 : index
    %c0_13 = arith.constant 0 : index
    %27 = vector.load %arg6[%c0_12, %c0_13] : memref<1x128xf32, #tpu.memory_space<vmem>>, vector<1x128xf32>
    %28 = vector.broadcast %27 : vector<1x128xf32> to vector<16x128xf32>
    %29 = arith.addf %26, %28 : vector<16x128xf32>
    %cst_14 = arith.constant 1.702000e+00 : f32
    %30 = vector.broadcast %cst_14 : f32 to vector<16x128xf32>
    %31 = arith.mulf %30, %29 : vector<16x128xf32>
    %32 = arith.negf %31 : vector<16x128xf32>
    %33 = math.exp %32 : vector<16x128xf32>
    %cst_15 = arith.constant 1.000000e+00 : f32
    %34 = vector.broadcast %cst_15 : f32 to vector<16x128xf32>
    %35 = arith.addf %34, %33 : vector<16x128xf32>
    %36 = arith.divf %34, %35 : vector<16x128xf32>
    %37 = arith.mulf %29, %36 : vector<16x128xf32>
    %c0_16 = arith.constant 0 : index
    %c0_17 = arith.constant 0 : index
    %38 = vector.load %arg7[%c0_16, %c0_17] : memref<16x128xf32, #tpu.memory_space<vmem>>, vector<16x128xf32>
    tpu.vector_store %arg7[%c0_16, %c0_17], %37 {strides = array<i32>} : memref<16x128xf32, #tpu.memory_space<vmem>>, vector<16x128xf32>,
    return
  }
  func.func @transform_0(%arg0: i32, %arg1: i32) -> (i32, i32) {
    %c0_i32 = arith.constant 0 : i32
    %c0_i32_0 = arith.constant 0 : i32
    return %arg0, %c0_i32 : i32, i32
  }
  func.func @transform_1(%arg0: i32, %arg1: i32) -> (i32, i32) {
    %c0_i32 = arith.constant 0 : i32
    %c0_i32_0 = arith.constant 0 : i32
    %c0_i32_1 = arith.constant 0 : i32
    return %c0_i32, %c0_i32_0 : i32, i32
  }
  func.func @transform_2(%arg0: i32, %arg1: i32) -> (i32, i32) {
    %c0_i32 = arith.constant 0 : i32
    %c0_i32_0 = arith.constant 0 : i32
    %c0_i32_1 = arith.constant 0 : i32
    return %c0_i32, %c0_i32_0 : i32, i32
  }
  func.func @transform_3(%arg0: i32, %arg1: i32) -> (i32, i32) {
    %c0_i32 = arith.constant 0 : i32
    %c0_i32_0 = arith.constant 0 : i32
    return %c0_i32, %arg1 : i32, i32
  }
  func.func @transform_4(%arg0: i32, %arg1: i32) -> (i32, i32) {
    %c0_i32 = arith.constant 0 : i32
    %c0_i32_0 = arith.constant 0 : i32
    return %c0_i32, %arg1 : i32, i32
  }
  func.func @transform_5(%arg0: i32, %arg1: i32) -> (i32, i32) {
    %c0_i32 = arith.constant 0 : i32
    return %arg0, %arg1 : i32, i32
  }
}

module attributes {stable_mosaic.version = 11 : i64} {
  func.func @_fused_linear_kernel(%arg0: i32, %arg1: i32, %arg2: memref<2x32xf32, #tpu.memory_space<vmem>>, %arg3: memref<1x32xf32, #tpu.memory_space<vmem>>, %arg4: memref<1x32xf32, #tpu.memory_space<vmem>>, %arg5: memref<32x16xf32, #tpu.memory_space<vmem>>, %arg6: memref<1x16xf32, #tpu.memory_space<vmem>>, %arg7: memref<2x16xf32, #tpu.memory_space<vmem>>) attributes {dimension_semantics = [#tpu.dimension_semantics<parallel>, #tpu.dimension_semantics<parallel>], iteration_bounds = array<i64: 1, 1>, scalar_prefetch = 0 : i64, scratch_operands = 0 : i64, tpu.core_type = #tpu.core_type<tc>, window_params = [{transform_indices = @transform_0, window_bounds = array<i64: 2, 32>}, {pipeline_mode = #tpu.pipeline_mode<synchronous>, transform_indices = @transform_1, window_bounds = array<i64: 1, 32>}, {pipeline_mode = #tpu.pipeline_mode<synchronous>, transform_indices = @transform_2, window_bounds = array<i64: 1, 32>}, {transform_indices = @transform_3, window_bounds = array<i64: 32, 16>}, {transform_indices = @transform_4, window_bounds = array<i64: 1, 16>}, {transform_indices = @transform_5, window_bounds = array<i64: 2, 16>}]} {
    %c0 = arith.constant 0 : index
    %c0_0 = arith.constant 0 : index
    %0 = vector.load %arg2[%c0, %c0_0] : memref<2x32xf32, #tpu.memory_space<vmem>>, vector<2x32xf32>
    %cst = arith.constant dense<0.000000e+00> : vector<2xf32>
    %1 = vector.multi_reduction <add>, %0, %cst [1] : vector<2x32xf32> to vector<2xf32>
    %2 = vector.shape_cast %1 : vector<2xf32> to vector<2x1xf32>
    %cst_1 = arith.constant 3.200000e+01 : f32
    %3 = vector.broadcast %cst_1 : f32 to vector<2x1xf32>
    %4 = arith.divf %2, %3 : vector<2x1xf32>
    %5 = vector.broadcast %4 : vector<2x1xf32> to vector<2x32xf32>
    %6 = arith.subf %0, %5 : vector<2x32xf32>
    %7 = arith.mulf %6, %6 : vector<2x32xf32>
    %cst_2 = arith.constant dense<0.000000e+00> : vector<2xf32>
    %8 = vector.multi_reduction <add>, %7, %cst_2 [1] : vector<2x32xf32> to vector<2xf32>
    %9 = vector.shape_cast %8 : vector<2xf32> to vector<2x1xf32>
    %cst_3 = arith.constant 3.200000e+01 : f32
    %10 = vector.broadcast %cst_3 : f32 to vector<2x1xf32>
    %11 = arith.divf %9, %10 : vector<2x1xf32>
    %12 = vector.broadcast %4 : vector<2x1xf32> to vector<2x32xf32>
    %13 = arith.subf %0, %12 : vector<2x32xf32>
    %cst_4 = arith.constant 9.99999974E-6 : f32
    %14 = vector.broadcast %cst_4 : f32 to vector<2x1xf32>
    %15 = arith.addf %11, %14 : vector<2x1xf32>
    %16 = math.rsqrt %15 : vector<2x1xf32>
    %17 = vector.broadcast %16 : vector<2x1xf32> to vector<2x32xf32>
    %18 = arith.mulf %13, %17 : vector<2x32xf32>
    %c0_5 = arith.constant 0 : index
    %c0_6 = arith.constant 0 : index
    %19 = vector.load %arg3[%c0_5, %c0_6] : memref<1x32xf32, #tpu.memory_space<vmem>>, vector<1x32xf32>
    %20 = vector.broadcast %19 : vector<1x32xf32> to vector<2x32xf32>
    %21 = arith.mulf %18, %20 : vector<2x32xf32>
    %c0_7 = arith.constant 0 : index
    %c0_8 = arith.constant 0 : index
    %22 = vector.load %arg4[%c0_7, %c0_8] : memref<1x32xf32, #tpu.memory_space<vmem>>, vector<1x32xf32>
    %23 = vector.broadcast %22 : vector<1x32xf32> to vector<2x32xf32>
    %24 = arith.addf %21, %23 : vector<2x32xf32>
    %c0_9 = arith.constant 0 : index
    %c0_10 = arith.constant 0 : index
    %25 = vector.load %arg5[%c0_9, %c0_10] : memref<32x16xf32, #tpu.memory_space<vmem>>, vector<32x16xf32>
    %cst_11 = arith.constant dense<0.000000e+00> : vector<2x16xf32>
    %26 = tpu.matmul %24, %25, %cst_11 {dimension_numbers = #tpu.dot_dimension_numbers<[1], [0], [0], [1], [0, 0, 1, 1], [], []>} : vector<2x32xf32>, vector<32x16xf32>, vector<2x16xf32> -> vector<2x16xf32>
    %c0_12 = arith.constant 0 : index
    %c0_13 = arith.constant 0 : index
    %27 = vector.load %arg6[%c0_12, %c0_13] : memref<1x16xf32, #tpu.memory_space<vmem>>, vector<1x16xf32>
    %28 = vector.broadcast %27 : vector<1x16xf32> to vector<2x16xf32>
    %29 = arith.addf %26, %28 : vector<2x16xf32>
    %c0_14 = arith.constant 0 : index
    %c0_15 = arith.constant 0 : index
    %30 = vector.load %arg7[%c0_14, %c0_15] : memref<2x16xf32, #tpu.memory_space<vmem>>, vector<2x16xf32>
    tpu.vector_store %arg7[%c0_14, %c0_15], %29 {strides = array<i32>} : memref<2x16xf32, #tpu.memory_space<vmem>>, vector<2x16xf32>,
    return
  }
  func.func @transform_0(%arg0: i32, %arg1: i32) -> (i32, i32) {
    %c0_i32 = arith.constant 0 : i32
    %c0_i32_0 = arith.constant 0 : i32
    return %arg0, %c0_i32 : i32, i32
  }
  func.func @transform_1(%arg0: i32, %arg1: i32) -> (i32, i32) {
    %c0_i32 = arith.constant 0 : i32
    %c0_i32_0 = arith.constant 0 : i32
    %c0_i32_1 = arith.constant 0 : i32
    return %c0_i32, %c0_i32_0 : i32, i32
  }
  func.func @transform_2(%arg0: i32, %arg1: i32) -> (i32, i32) {
    %c0_i32 = arith.constant 0 : i32
    %c0_i32_0 = arith.constant 0 : i32
    %c0_i32_1 = arith.constant 0 : i32
    return %c0_i32, %c0_i32_0 : i32, i32
  }
  func.func @transform_3(%arg0: i32, %arg1: i32) -> (i32, i32) {
    %c0_i32 = arith.constant 0 : i32
    %c0_i32_0 = arith.constant 0 : i32
    return %c0_i32, %arg1 : i32, i32
  }
  func.func @transform_4(%arg0: i32, %arg1: i32) -> (i32, i32) {
    %c0_i32 = arith.constant 0 : i32
    %c0_i32_0 = arith.constant 0 : i32
    return %c0_i32, %arg1 : i32, i32
  }
  func.func @transform_5(%arg0: i32, %arg1: i32) -> (i32, i32) {
    %c0_i32 = arith.constant 0 : i32
    return %arg0, %arg1 : i32, i32
  }
}

</mosaic_0001>

<bundles_post_ra>
// kernel: text_encoder_forward.15
= control target key start
LH: loop header
LB: loop body
LE: loop exit
PB: predicated region body
PF: predicated region fallthrough
CT: control target
= control target key end

     0   :  { %vm30_vm0 = vcmask 261120   ;;  %s204_s1 = inlined_call_operand.vmem [shape: f32[32,32], index: 1, kind: input, shape index: {}]   ;;  %s205_s0 = inlined_call_operand.vmem [shape: f32[16,32], index: 0, kind: input, shape index: {}]   ;;  %s206_s2 = inlined_call_operand.vmem [shape: f32[1,32], index: 2, kind: input, shape index: {}]   ;;  %s207_s3 = inlined_call_operand.vmem [shape: f32[16,32], index: 3, kind: input, shape index: {}]   ;;  %s208_s4 = inlined_call_operand.vmem [shape: f32[16,32], index: 4, kind: output, shape index: {}]  }
   0x1   :  { %v22_v0 = vld [vmem:[%s204_s1 + $0x18] sm:$0xff]  ;;  %v21_v1 = vld [vmem:[%s204_s1 + $0x10] sm:$0xff]  ;;  %v17_v2 = vld [vmem:[%s205_s0] sm:$0xff] }
   0x2   :  { %131 = vmatprep.subr.mxu0 %v22_v0  ;;  %v20_v3 = vld [vmem:[%s204_s1 + $0x8] sm:$0xff]  ;;  %139 = vmatprep.mubr.msk.f32.mxu0 %vm30_vm0, %v17_v2  ;;  %v19_v4 = vld [vmem:[%s204_s1] sm:$0xff] }
   0x3   :  { %132 = vmatpush3.msra.mxu0 %v22_v0  ;;  %v18_v5 = vld [vmem:[%s205_s0 + $0x8] sm:$0xff]  ;;  %v122_v6 = vld [vmem:[%s206_s2] ss:$0 sm:$0xff] }
   0x4   :  { %133 = vmatprep.subr.mxu0 %v21_v1  ;;  %v113_v8 = vld [vmem:[%s207_s3 + $0x8] sm:$0xff]  ;;  %v112_v11 = vld [vmem:[%s207_s3] sm:$0xff] }
   0x5   :  { %134 = vmatpush3.msra.mxu0 %v21_v1 }
   0x6   :  { %135 = vmatprep.subr.mxu0 %v20_v3 }
   0x7   :  { %136 = vmatpush3.msra.mxu0 %v20_v3 }
   0x8   :  { %137 = vmatprep.subr.mxu0 %v19_v4 }
   0x9   :  { %138 = vmatpush3.msra.mxu0 %v19_v4 }
   0xa   :  { %140 = vmatmul.mubr.msk.f32.vlgmr.msra.gmra.mxu0 %vm30_vm0, %v18_v5 }
  0xca   :  { %v141_v7 = vpop.f32.mrf.mxu0 }
  0xcb   :  { %v109_v9 = vadd.f32 %v141_v7, %v122_v6 }
  0xcc   :  { %v103_v10 = vpop.f32.mrf.mxu0 }
  0xcd   :  { %v115_v12 = vadd.f32 %v113_v8, %v109_v9  ;;  %v104_v13 = vadd.f32 %v122_v6, %v103_v10 }
  0xcf   :  { %117 = vst.msk [vmem:[%s208_s4 + $0x8] sm:$0xff] %vm30_vm0, %v115_v12  ;;  %v114_v14 = vadd.f32 %v112_v11, %v104_v13 }
  0xd1   :  { %116 = vst.msk [vmem:[%s208_s4] sm:$0xff] %vm30_vm0, %v114_v14 }

// kernel: text_encoder_forward.13
= control target key start
LH: loop header
LB: loop body
LE: loop exit
PB: predicated region body
PF: predicated region fallthrough
CT: control target
= control target key end

     0   :  { %vm22_vm0 = vcmask 261120   ;;  %vm160_vm1 = vcmask 785408   ;;  %s262_s0 = inlined_call_operand.vmem [shape: f32[16,32], index: 0, kind: input, shape index: {}]   ;;  %s263_s3 = inlined_call_operand.vmem [shape: f32[32,96], index: 3, kind: input, shape index: {}]   ;;  %s264_s1 = inlined_call_operand.vmem [shape: f32[1,32], index: 1, kind: input, shape index: {}]   ;;  %s265_s2 = inlined_call_operand.vmem [shape: f32[1,32], index: 2, kind: input, shape index: {}]   ;;  %s266_s4 = inlined_call_operand.vmem [shape: f32[1,96], index: 4, kind: input, shape index: {}]   ;;  %s267_s5 = inlined_call_operand.vmem [shape: f32[16,96], index: 5, kind: output, shape index: {}]  }
   0x1   :  { %v20_v0 = vld [vmem:[%s262_s0] sm:$0xff]  ;;  %v21_v1 = vld [vmem:[%s262_s0 + $0x8] sm:$0xff]  ;;  %v71_v14 = vld [vmem:[%s263_s3 + $0x18] sm:$0xff] }
   0x2   :  { %v23_v2 = vsel %vm22_vm0, %v20_v0, 0.0  ;;  %v26_v3 = vsel %vm22_vm0, %v21_v1, 0.0  ;;  %v70_v15 = vld [vmem:[%s263_s3 + $0x10] sm:$0xff]  ;;  %178 = vmatprep.subr.mxu0 %v71_v14  ;;  %v69_v16 = vld [vmem:[%s263_s3 + $0x8] sm:$0xff]  ;;  %v68_v17 = vld [vmem:[%s263_s3] sm:$0xff] }
   0x3   :  { %24 = vadd.xlane.f32.xlu0 %v23_v2  ;;  %179 = vmatpush3.msra.mxu0 %v71_v14  ;;  %v167_v25 = vld [vmem:[%s264_s1] ss:$0 sm:$0xff] }
   0x4   :  { %180 = vmatprep.subr.mxu0 %v70_v15  ;;  %v168_v27 = vld [vmem:[%s265_s2] ss:$0 sm:$0xff] }
   0x5   :  { %181 = vmatpush3.msra.mxu0 %v70_v15  ;;  %v169_v34 = vld [vmem:[%s266_s4] ss:$0 sm:$0xff] }
   0x6   :  { %182 = vmatprep.subr.mxu0 %v69_v16 }
   0x7   :  { %27 = vadd.xlane.f32.xlu0 %v26_v3  ;;  %183 = vmatpush3.msra.mxu0 %v69_v16 }
   0x8   :  { %184 = vmatprep.subr.mxu0 %v68_v17 }
   0x9   :  { %185 = vmatpush3.msra.mxu0 %v68_v17 }
  0x8c   :  { %v25_v4 = vpop.xlane.xlu0 %24 }
  0x8d   :  { %v30_v5 = vmul.f32 0.03125, %v25_v4 }
  0x8f   :  { %v32_v6 = vsub.f32 %v20_v0, %v30_v5 }
  0x90   :  { %v28_v7 = vpop.xlane.xlu0 %27 }
  0x91   :  { %v31_v8 = vmul.f32 0.03125, %v28_v7  ;;  %v34_v9 = vmul.f32 %v32_v6, %v32_v6 }
  0x93   :  { %v33_v10 = vsub.f32 %v21_v1, %v31_v8  ;;  %v36_v11 = vsel %vm22_vm0, %v34_v9, 0.0 }
  0x94   :  { %37 = vadd.xlane.f32.xlu1 %v36_v11 }
  0x95   :  { %v35_v12 = vmul.f32 %v33_v10, %v33_v10 }
  0x97   :  { %v39_v13 = vsel %vm22_vm0, %v35_v12, 0.0 }
  0x98   :  { %40 = vadd.xlane.f32.xlu1 %v39_v13 }
 0x11d   :  { %v38_v18 = vpop.xlane.xlu1 %37 }
 0x11e   :  { %v42_v19 = vmul.f32 0.03125, %v38_v18 }
 0x120   :  { %v44_v20 = vadd.f32 1e-05, %v42_v19 }
 0x121   :  { %v41_v21 = vpop.xlane.xlu1 %40 }
 0x122   :  { %189 = vrsqrt.f32 %v44_v20  ;;  %v43_v22 = vmul.f32 0.03125, %v41_v21 }
 0x124   :  { %v45_v23 = vadd.f32 1e-05, %v43_v22 }
 0x126   :  { %191 = vrsqrt.f32 %v45_v23 }
 0x12f   :  { %v190_v24 = vpop.eup %189 }
 0x130   :  { %v48_v26 = vmul.f32 %v190_v24, %v32_v6 }
 0x132   :  { %v57_v28 = vmul.f32 %v167_v25, %v48_v26 }
 0x133   :  { %v192_v29 = vpop.eup %191 }
 0x134   :  { %v49_v30 = vmul.f32 %v192_v29, %v33_v10  ;;  %v66_v31 = vadd.f32 %v168_v27, %v57_v28 }
 0x136   :  { %v58_v32 = vmul.f32 %v167_v25, %v49_v30  ;;  %186 = vmatprep.mubr.msk.f32.mxu0 %vm22_vm0, %v66_v31 }
 0x138   :  { %v67_v33 = vadd.f32 %v168_v27, %v58_v32 }
 0x13a   :  { %187 = vmatmul.mubr.msk.f32.vlgmr.msra.gmra.mxu0 %vm22_vm0, %v67_v33 }
 0x1fa   :  { %v188_v35 = vpop.f32.mrf.mxu0 }
 0x1fb   :  { %v157_v36 = vadd.f32 %v188_v35, %v169_v34 }
 0x1fc   :  { %v151_v37 = vpop.f32.mrf.mxu0 }
 0x1fd   :  { %162 = vst.msk [vmem:[%s267_s5 + $0x8] sm:$0xff] %vm160_vm1, %v157_v36  ;;  %v152_v38 = vadd.f32 %v169_v34, %v151_v37 }
 0x1ff   :  { %161 = vst.msk [vmem:[%s267_s5] sm:$0xff] %vm160_vm1, %v152_v38 }

// kernel: text_encoder_forward.12
= control target key start
LH: loop header
LB: loop body
LE: loop exit
PB: predicated region body
PF: predicated region fallthrough
CT: control target
= control target key end

     0   :  { %s218_s9 = smov 0   ;;  %s246_s0 = inlined_call_operand.vmem [shape: f32[2,8,32], index: 0, kind: input, shape index: {}]   ;;  %s247_s1 = inlined_call_operand.vmem [shape: f32[8,32], index: 1, kind: input, shape index: {}]   ;;  %s248_s2 = inlined_call_operand.vmem [shape: f32[2,8,32], index: 2, kind: output, shape index: {}]  }
   0x1 LB: > { %s197_s10 = sadd.s32 4294967295, %s220_s9   ;;  %p201_p0 = scmp.ge.s32.totalorder %s220_s9, 1  ;;  %s220_s9 = sphi %s218_s9, %s12_s9  }
   0x2   : > { %p111_p1 = scmp.lt.s32.totalorder %s220_s9, 3 }
   0x4   : > { %p112_p2 = pnand %p201_p0, %p111_p1 }
   0x5   : > { %p131_p3 = scmp.lt.s32.totalorder (!%p112_p2), %s197_s10, 1 }
   0x6   : > { %115 = sbr.rel (%p112_p2) target bundleno = 18 (0x12), region = 28 }
   0xb   : > { %s250_s10 = smov (!%p131_p3, %s197_s10), 1  ;;  %v140_v0 = vld [vmem:[%s247_s1] sm:$0xff]  ;;  %vm142_vm0 = vcmask 261120  }
   0xc   : > { %s202_s11 = sshll.u32 %s250_s10, 3 }
   0xd   : > { %s134_s16 = scalar_lea.vmem %s246_s0, %s202_s11  ;;  %s138_s19 = scalar_lea.vmem %s248_s2, %s202_s11 }
   0xe   : > { %v139_v1 = vld [vmem:[%s134_s16] sm:$0xff] }
   0xf   : > { %v141_v2 = vadd.f32 %v140_v0, %v139_v1 }
  0x11   : > { %143 = vst.msk [vmem:[%s138_s19] sm:$0xff] %vm142_vm0, %v141_v2 }
  0x12 PF: > { %s12_s9 = sadd.s32 1, %s220_s9  }
  0x13   : > { %p9_p4 = scmp.ge.s32.totalorder %s12_s9, 4  }
  0x15   :  { %11 = sbr.rel (!%p9_p4) target bundleno = 1 (0x1), region = 58 }

// kernel: text_encoder_forward.14
= control target key start
LH: loop header
LB: loop body
LE: loop exit
PB: predicated region body
PF: predicated region fallthrough
CT: control target
= control target key end

     0   :  { %s606_s6 = smov 0   ;;  %s647_s0 = inlined_call_operand.vmem [shape: f32[2,8,96], index: 0, kind: input, shape index: {}]   ;;  %s648_s1 = inlined_call_operand.vmem [shape: f32[2,8,32], index: 1, kind: output, shape index: {}]  }
   0x1 LB: > { %s513_s7 = sadd.s32 4294967295, %s586_s6   ;;  %p517_p0 = scmp.ge.s32.totalorder %s586_s6, 1  ;;  %s586_s6 = sphi %s606_s6, %s11_s6  }
   0x2   : > { %p86_p1 = scmp.lt.s32.totalorder %s586_s6, 3 }
   0x4   : > { %p87_p2 = pnand %p517_p0, %p86_p1 }
   0x5   : > { %p104_p3 = scmp.lt.s32.totalorder (!%p87_p2), %s513_s7, 1  ;;  %s590_s12 = smov (!%p87_p2), 96  }
   0x6   : > { %90 = sbr.rel (%p87_p2) target bundleno = 1463 (0x5b7), region = 24  ;;  %s591_s13 = smov (!%p87_p2), 64  }
   0x7   : > { %s592_s14 = smov (!%p87_p2), 80   ;;  %s593_s15 = smov (!%p87_p2), 112  }
   0x8   : > { %s594_s16 = smov (!%p87_p2), 48   ;;  %s595_s17 = smov (!%p87_p2), 16  }
   0xb   : > { %v588_v0 = vmov 0.0   ;;  %vm589_vm0 = vmmov 0   ;;  %s650_s7 = smov (!%p104_p3, %s513_s7), 1  ;;  %vm121_vm1 = vcmask 130048   ;;  %v113_v3 = vlaneseq }
   0xc   : > { %536 = vmatprep.subr.mxu0 %v588_v0  ;;  %538 = vmatprep.mubr.msk.f32.mxu0 %vm589_vm0, %v588_v0  ;;  %s518_s8 = sshll.u32 %s650_s7, 3  ;;  %vm198_vm3 = vcmask 64512   ;;  %vm458_vm4 = vcmask 261120  }
   0xd   : > { %541 = vmatprep.subr.mxu1 %v588_v0  ;;  %543 = vmatprep.mubr.msk.f32.mxu1 %vm589_vm0, %v588_v0  ;;  %s107_s11 = scalar_lea.vmem %s647_s0, %s518_s8  ;;  %v114_v4 = vshrl.u32 %v113_v3, 7  ;;  %v116_v5 = vand.u32 127, %v113_v3  ;;  %s111_s20 = scalar_lea.vmem %s648_s1, %s518_s8 }
   0xe   : > { %v112_v1 = vld [vmem:[%s107_s11] sm:$0xff] }
   0xf   : > { %119 = vrot.lane.b32.xlu0 %v112_v1, %s590_s12  ;;  %210 = vrot.lane.b32.xlu1 %v112_v1, %s591_s13  ;;  %vm117_vm2 = vcmp.le.s32.totalorder %v116_v5, %v114_v4 }
  0x13   : > { %288 = vrot.lane.b32.xlu1 %v112_v1, %s592_s14 }
  0x81   : > { %v120_v2 = vpop.permute.xlu0 %119  ;;  %v211_v11 = vpop.permute.xlu1 %210 }
  0x82   : > { %537 = vmatpush3.xpose.msk.msra.mxu0 %vm121_vm1, %v120_v2  ;;  %542 = vmatpush3.msra.mxu1 %v211_v11 }
  0x83   : > { %551 = vmatprep.subr.mxu0 %v588_v0  ;;  %546 = vmatprep.subr.mxu1 %v588_v0 }
  0x85   : > { %539 = vmatmul.mubr.msk.f32.vlgmr.msra.gmra.mxu0 %vm121_vm1, %v112_v1  ;;  %v289_v17 = vpop.permute.xlu1 %288 }
  0x86   : > { %553 = vmatprep.mubr.msk.f32.mxu0 %vm589_vm0, %v588_v0 }
 0x145   : > { %v192_v6 = vpop.f32.mrf.mxu0 }
 0x146   : > { %v196_v7 = vmul.f32 0.25, %v192_v6 }
 0x147   : > { %v540_v8 = vpop.f32.mrf.mxu0 }
 0x148   : > { %v197_v9 = vsel %vm117_vm2, %v196_v7, -1e+30 }
 0x149   : > { %v199_v10 = vsel %vm198_vm3, %v197_v9, -inf }
 0x14a   : > { %200 = vmax.xlane.f32.xlu0 %v199_v10 }
 0x1d3   : > { %v201_v12 = vpop.xlane.xlu0 %200 }
 0x1d4   : > { %v202_v13 = vsub.f32 %v197_v9, %v201_v12 }
 0x1d6   : > { %v203_v14 = vmul.f32 1.442695, %v202_v13 }
 0x1d8   : > { %572 = vpow2.f32 %v203_v14 }
 0x1e5   : > { %v573_v15 = vpop.eup %572 }
 0x1e6   : > { %v205_v16 = vsel %vm198_vm3, %v573_v15, 0.0 }
 0x1e7   : > { %206 = vadd.xlane.f32.xlu1 %v205_v16 }
 0x1f8   : > { %286 = vrot.lane.b32.xlu1 %v112_v1, %s593_s15 }
 0x270   : > { %v207_v18 = vpop.xlane.xlu1 %206 }
 0x271   : > { %574 = vrcp.f32 %v207_v18 }
 0x274   : > { %v287_v21 = vpop.permute.xlu1 %286 }
 0x27e   : > { %v575_v19 = vpop.eup %574 }
 0x27f   : > { %v209_v20 = vmul.f32 %v575_v19, %v573_v15 }
 0x281   : > { %544 = vmatmul.mubr.msk.f32.vlgmr.msra.gmra.mxu1 %vm198_vm3, %v209_v20 }
 0x282   : > { %547 = vmatpush3.xpose.msk.msra.mxu1 %vm121_vm1, %v289_v17  ;;  %548 = vmatprep.mubr.msk.f32.mxu1 %vm589_vm0, %v588_v0 }
 0x285   : > { %549 = vmatmul.mubr.msk.f32.vlgmr.msra.gmra.mxu1 %vm121_vm1, %v287_v21 }
 0x341   : > { %v282_v22 = vpop.f32.mrf.mxu1 }
 0x343   : > { %v545_v23 = vpop.f32.mrf.mxu1 }
 0x345   : > { %v360_v24 = vpop.f32.mrf.mxu1 }
 0x346   : > { %v364_v25 = vmul.f32 0.25, %v360_v24 }
 0x347   : > { %v550_v26 = vpop.f32.mrf.mxu1 }
 0x348   : > { %v365_v27 = vsel %vm117_vm2, %v364_v25, -1e+30 }
 0x349   : > { %v366_v28 = vsel %vm198_vm3, %v365_v27, -inf }
 0x34a   : > { %367 = vmax.xlane.f32.xlu1 %v366_v28 }
 0x3d3   : > { %v368_v29 = vpop.xlane.xlu1 %367 }
 0x3d4   : > { %v369_v30 = vsub.f32 %v365_v27, %v368_v29 }
 0x3d6   : > { %v370_v31 = vmul.f32 1.442695, %v369_v30 }
 0x3d8   : > { %576 = vpow2.f32 %v370_v31 }
 0x3e5   : > { %v577_v32 = vpop.eup %576 }
 0x3e6   : > { %v372_v33 = vsel %vm198_vm3, %v577_v32, 0.0 }
 0x3e7   : > { %373 = vadd.xlane.f32.xlu0 %v372_v33 }
 0x3fd   : > { %377 = vrot.lane.b32.xlu0 %v112_v1, %s594_s16 }
 0x470   : > { %v374_v34 = vpop.xlane.xlu0 %373 }
 0x471   : > { %578 = vrcp.f32 %v374_v34 }
 0x474   : > { %v378_v35 = vpop.permute.xlu0 %377 }
 0x475   : > { %552 = vmatpush3.msra.mxu0 %v378_v35 }
 0x47e   : > { %v579_v36 = vpop.eup %578 }
 0x47f   : > { %v376_v37 = vmul.f32 %v579_v36, %v577_v32 }
 0x481   : > { %554 = vmatmul.mubr.msk.f32.vlgmr.msra.gmra.mxu0 %vm198_vm3, %v376_v37 }
 0x541   : > { %v449_v38 = vpop.f32.mrf.mxu0 }
 0x542   : > { %454 = vrot.lane.b32.xlu0 %v449_v38, %s595_s17 }
 0x543   : > { %v555_v39 = vpop.f32.mrf.mxu0 }
 0x5b4   : > { %v455_v40 = vpop.permute.xlu0 %454 }
 0x5b5   : > { %v457_v41 = vsel %vm121_vm1, %v282_v22, %v455_v40 }
 0x5b6   : > { %459 = vst.msk [vmem:[%s111_s20] sm:$0xff] %vm458_vm4, %v457_v41 }
 0x5b7 PF: > { %s11_s6 = sadd.s32 1, %s586_s6  }
 0x5b8   : > { %p8_p4 = scmp.ge.s32.totalorder %s11_s6, 4  }
 0x5ba   :  { %10 = sbr.rel (!%p8_p4) target bundleno = 1 (0x1), region = 54 }

// kernel: text_encoder_forward.17
= control target key start
LH: loop header
LB: loop body
LE: loop exit
PB: predicated region body
PF: predicated region fallthrough
CT: control target
= control target key end

     0   :  { %vm121_vm0 = vcmask 261120   ;;  %s276_s1 = inlined_call_operand.vmem [shape: f32[128,32], index: 1, kind: input, shape index: {}]   ;;  %s277_s0 = inlined_call_operand.vmem [shape: f32[16,128], index: 0, kind: input, shape index: {}]   ;;  %s278_s2 = inlined_call_operand.vmem [shape: f32[1,32], index: 2, kind: input, shape index: {}]   ;;  %s279_s3 = inlined_call_operand.vmem [shape: f32[16,32], index: 3, kind: input, shape index: {}]   ;;  %s280_s4 = inlined_call_operand.vmem [shape: f32[16,32], index: 4, kind: output, shape index: {}]  }
   0x1   :  { %v34_v0 = vld [vmem:[%s276_s1 + $0x78] sm:$0xff]  ;;  %v33_v1 = vld [vmem:[%s276_s1 + $0x70] sm:$0xff]  ;;  %v32_v2 = vld [vmem:[%s276_s1 + $0x68] sm:$0xff] }
   0x2   :  { %147 = vmatprep.subr.mxu0 %v34_v0  ;;  %v31_v3 = vld [vmem:[%s276_s1 + $0x60] sm:$0xff]  ;;  %v30_v5 = vld [vmem:[%s276_s1 + $0x58] sm:$0xff]  ;;  %v29_v6 = vld [vmem:[%s276_s1 + $0x50] sm:$0xff] }
   0x3   :  { %148 = vmatpush3.msra.mxu0 %v34_v0  ;;  %v17_v4 = vld [vmem:[%s277_s0] sm:$0xff]  ;;  %v28_v7 = vld [vmem:[%s276_s1 + $0x48] sm:$0xff]  ;;  %v26_v9 = vld [vmem:[%s276_s1 + $0x38] sm:$0xff] }
   0x4   :  { %149 = vmatprep.subr.mxu0 %v33_v1  ;;  %179 = vmatprep.mubr.f32.mxu0 %v17_v4  ;;  %v27_v8 = vld [vmem:[%s276_s1 + $0x40] sm:$0xff]  ;;  %v25_v10 = vld [vmem:[%s276_s1 + $0x30] sm:$0xff]  ;;  %v24_v11 = vld [vmem:[%s276_s1 + $0x28] sm:$0xff] }
   0x5   :  { %150 = vmatpush3.msra.mxu0 %v33_v1  ;;  %v23_v12 = vld [vmem:[%s276_s1 + $0x20] sm:$0xff]  ;;  %v22_v13 = vld [vmem:[%s276_s1 + $0x18] sm:$0xff]  ;;  %v21_v14 = vld [vmem:[%s276_s1 + $0x10] sm:$0xff] }
   0x6   :  { %151 = vmatprep.subr.mxu0 %v32_v2  ;;  %v20_v15 = vld [vmem:[%s276_s1 + $0x8] sm:$0xff]  ;;  %v19_v16 = vld [vmem:[%s276_s1] sm:$0xff] }
   0x7   :  { %152 = vmatpush3.msra.mxu0 %v32_v2  ;;  %v18_v17 = vld [vmem:[%s277_s0 + $0x8] sm:$0xff]  ;;  %v128_v18 = vld [vmem:[%s278_s2] ss:$0 sm:$0xff] }
   0x8   :  { %153 = vmatprep.subr.mxu0 %v31_v3  ;;  %v118_v20 = vld [vmem:[%s279_s3 + $0x8] sm:$0xff]  ;;  %v117_v23 = vld [vmem:[%s279_s3] sm:$0xff] }
   0x9   :  { %154 = vmatpush3.msra.mxu0 %v31_v3 }
   0xa   :  { %155 = vmatprep.subr.mxu0 %v30_v5 }
   0xb   :  { %156 = vmatpush3.msra.mxu0 %v30_v5 }
   0xc   :  { %157 = vmatprep.subr.mxu0 %v29_v6 }
   0xd   :  { %158 = vmatpush3.msra.mxu0 %v29_v6 }
   0xe   :  { %159 = vmatprep.subr.mxu0 %v28_v7 }
   0xf   :  { %160 = vmatpush3.msra.mxu0 %v28_v7 }
  0x10   :  { %161 = vmatprep.subr.mxu0 %v27_v8 }
  0x11   :  { %162 = vmatpush3.msra.mxu0 %v27_v8 }
  0x12   :  { %163 = vmatprep.subr.mxu0 %v26_v9 }
  0x13   :  { %164 = vmatpush3.msra.mxu0 %v26_v9 }
  0x14   :  { %165 = vmatprep.subr.mxu0 %v25_v10 }
  0x15   :  { %166 = vmatpush3.msra.mxu0 %v25_v10 }
  0x16   :  { %167 = vmatprep.subr.mxu0 %v24_v11 }
  0x17   :  { %168 = vmatpush3.msra.mxu0 %v24_v11 }
  0x18   :  { %169 = vmatprep.subr.mxu0 %v23_v12 }
  0x19   :  { %170 = vmatpush3.msra.mxu0 %v23_v12 }
  0x1a   :  { %171 = vmatprep.subr.mxu0 %v22_v13 }
  0x1b   :  { %172 = vmatpush3.msra.mxu0 %v22_v13 }
  0x1c   :  { %173 = vmatprep.subr.mxu0 %v21_v14 }
  0x1d   :  { %174 = vmatpush3.msra.mxu0 %v21_v14 }
  0x1e   :  { %175 = vmatprep.subr.mxu0 %v20_v15 }
  0x1f   :  { %176 = vmatpush3.msra.mxu0 %v20_v15 }
  0x20   :  { %177 = vmatprep.subr.mxu0 %v19_v16 }
  0x21   :  { %178 = vmatpush3.msra.mxu0 %v19_v16 }
  0x22   :  { %180 = vmatmul.mubr.f32.vlgmr.msra.gmra.mxu0 %v18_v17 }
  0xe2   :  { %v181_v19 = vpop.f32.mrf.mxu0 }
  0xe3   :  { %v114_v21 = vadd.f32 %v181_v19, %v128_v18 }
  0xe4   :  { %v108_v22 = vpop.f32.mrf.mxu0 }
  0xe5   :  { %v120_v24 = vadd.f32 %v118_v20, %v114_v21  ;;  %v109_v25 = vadd.f32 %v128_v18, %v108_v22 }
  0xe7   :  { %123 = vst.msk [vmem:[%s280_s4 + $0x8] sm:$0xff] %vm121_vm0, %v120_v24  ;;  %v119_v26 = vadd.f32 %v117_v23, %v109_v25 }
  0xe9   :  { %122 = vst.msk [vmem:[%s280_s4] sm:$0xff] %vm121_vm0, %v119_v26 }

// kernel: text_encoder_forward.16
= control target key start
LH: loop header
LB: loop body
LE: loop exit
PB: predicated region body
PF: predicated region fallthrough
CT: control target
= control target key end

     0   :  { %vm22_vm0 = vcmask 261120   ;;  %s287_s0 = inlined_call_operand.vmem [shape: f32[16,32], index: 0, kind: input, shape index: {}]   ;;  %s288_s3 = inlined_call_operand.vmem [shape: f32[32,128], index: 3, kind: input, shape index: {}]   ;;  %s289_s1 = inlined_call_operand.vmem [shape: f32[1,32], index: 1, kind: input, shape index: {}]   ;;  %s290_s2 = inlined_call_operand.vmem [shape: f32[1,32], index: 2, kind: input, shape index: {}]   ;;  %s291_s4 = inlined_call_operand.vmem [shape: f32[1,128], index: 4, kind: input, shape index: {}]   ;;  %s292_s5 = inlined_call_operand.vmem [shape: f32[16,128], index: 5, kind: output, shape index: {}]  }
   0x1   :  { %v20_v0 = vld [vmem:[%s287_s0] sm:$0xff]  ;;  %v21_v1 = vld [vmem:[%s287_s0 + $0x8] sm:$0xff]  ;;  %v71_v14 = vld [vmem:[%s288_s3 + $0x18] sm:$0xff] }
   0x2   :  { %v23_v2 = vsel %vm22_vm0, %v20_v0, 0.0  ;;  %v26_v3 = vsel %vm22_vm0, %v21_v1, 0.0  ;;  %v70_v15 = vld [vmem:[%s288_s3 + $0x10] sm:$0xff]  ;;  %195 = vmatprep.subr.mxu0 %v71_v14  ;;  %v69_v16 = vld [vmem:[%s288_s3 + $0x8] sm:$0xff]  ;;  %v68_v17 = vld [vmem:[%s288_s3] sm:$0xff] }
   0x3   :  { %24 = vadd.xlane.f32.xlu0 %v23_v2  ;;  %196 = vmatpush3.msra.mxu0 %v71_v14  ;;  %v182_v25 = vld [vmem:[%s289_s1] ss:$0 sm:$0xff] }
   0x4   :  { %197 = vmatprep.subr.mxu0 %v70_v15  ;;  %v183_v27 = vld [vmem:[%s290_s2] ss:$0 sm:$0xff] }
   0x5   :  { %198 = vmatpush3.msra.mxu0 %v70_v15  ;;  %v184_v34 = vld [vmem:[%s291_s4] ss:$0 sm:$0xff] }
   0x6   :  { %199 = vmatprep.subr.mxu0 %v69_v16 }
   0x7   :  { %27 = vadd.xlane.f32.xlu0 %v26_v3  ;;  %200 = vmatpush3.msra.mxu0 %v69_v16 }
   0x8   :  { %201 = vmatprep.subr.mxu0 %v68_v17 }
   0x9   :  { %202 = vmatpush3.msra.mxu0 %v68_v17 }
  0x8c   :  { %v25_v4 = vpop.xlane.xlu0 %24 }
  0x8d   :  { %v30_v5 = vmul.f32 0.03125, %v25_v4 }
  0x8f   :  { %v32_v6 = vsub.f32 %v20_v0, %v30_v5 }
  0x90   :  { %v28_v7 = vpop.xlane.xlu0 %27 }
  0x91   :  { %v31_v8 = vmul.f32 0.03125, %v28_v7  ;;  %v34_v9 = vmul.f32 %v32_v6, %v32_v6 }
  0x93   :  { %v33_v10 = vsub.f32 %v21_v1, %v31_v8  ;;  %v36_v11 = vsel %vm22_vm0, %v34_v9, 0.0 }
  0x94   :  { %37 = vadd.xlane.f32.xlu1 %v36_v11 }
  0x95   :  { %v35_v12 = vmul.f32 %v33_v10, %v33_v10 }
  0x97   :  { %v39_v13 = vsel %vm22_vm0, %v35_v12, 0.0 }
  0x98   :  { %40 = vadd.xlane.f32.xlu1 %v39_v13 }
 0x11d   :  { %v38_v18 = vpop.xlane.xlu1 %37 }
 0x11e   :  { %v42_v19 = vmul.f32 0.03125, %v38_v18 }
 0x120   :  { %v44_v20 = vadd.f32 1e-05, %v42_v19 }
 0x121   :  { %v41_v21 = vpop.xlane.xlu1 %40 }
 0x122   :  { %206 = vrsqrt.f32 %v44_v20  ;;  %v43_v22 = vmul.f32 0.03125, %v41_v21 }
 0x124   :  { %v45_v23 = vadd.f32 1e-05, %v43_v22 }
 0x126   :  { %208 = vrsqrt.f32 %v45_v23 }
 0x12f   :  { %v207_v24 = vpop.eup %206 }
 0x130   :  { %v48_v26 = vmul.f32 %v207_v24, %v32_v6 }
 0x132   :  { %v57_v28 = vmul.f32 %v182_v25, %v48_v26 }
 0x133   :  { %v209_v29 = vpop.eup %208 }
 0x134   :  { %v49_v30 = vmul.f32 %v209_v29, %v33_v10  ;;  %v66_v31 = vadd.f32 %v183_v27, %v57_v28 }
 0x136   :  { %v58_v32 = vmul.f32 %v182_v25, %v49_v30  ;;  %203 = vmatprep.mubr.msk.f32.mxu0 %vm22_vm0, %v66_v31 }
 0x138   :  { %v67_v33 = vadd.f32 %v183_v27, %v58_v32 }
 0x13a   :  { %204 = vmatmul.mubr.msk.f32.vlgmr.msra.gmra.mxu0 %vm22_vm0, %v67_v33 }
 0x1fa   :  { %v205_v35 = vpop.f32.mrf.mxu0 }
 0x1fb   :  { %v157_v36 = vadd.f32 %v205_v35, %v184_v34 }
 0x1fc   :  { %v151_v37 = vpop.f32.mrf.mxu0 }
 0x1fd   :  { %v188_v38 = vmul.f32 -1.702, %v157_v36  ;;  %v152_v39 = vadd.f32 %v184_v34, %v151_v37 }
 0x1ff   :  { %v166_v40 = vmul.f32 1.442695, %v188_v38  ;;  %v187_v41 = vmul.f32 -1.702, %v152_v39 }
 0x201   :  { %210 = vpow2.f32 %v166_v40  ;;  %v164_v42 = vmul.f32 1.442695, %v187_v41 }
 0x203   :  { %212 = vpow2.f32 %v164_v42 }
 0x20e   :  { %v211_v43 = vpop.eup %210 }
 0x20f   :  { %v169_v44 = vadd.f32 1.0, %v211_v43 }
 0x210   :  { %v213_v45 = vpop.eup %212 }
 0x211   :  { %214 = vrcp.f32 %v169_v44  ;;  %v168_v46 = vadd.f32 1.0, %v213_v45 }
 0x213   :  { %216 = vrcp.f32 %v168_v46 }
 0x21e   :  { %v215_v47 = vpop.eup %214 }
 0x21f   :  { %v175_v48 = vmul.f32 %v215_v47, %v157_v36 }
 0x220   :  { %v217_v49 = vpop.eup %216 }
 0x221   :  { %177 = vst [vmem:[%s292_s5 + $0x8] sm:$0xff] %v175_v48  ;;  %v174_v50 = vmul.f32 %v217_v49, %v152_v39 }
 0x223   :  { %176 = vst [vmem:[%s292_s5] sm:$0xff] %v174_v50 }

// kernel: text_encoder_forward.23
= control target key start
LH: loop header
LB: loop body
LE: loop exit
PB: predicated region body
PF: predicated region fallthrough
CT: control target
= control target key end

     0   :  { %vm22_vm0 = vcmask 254976   ;;  %s261_s0 = inlined_call_operand.vmem [shape: f32[2,32], index: 0, kind: input, shape index: {}]   ;;  %s262_s1 = inlined_call_operand.vmem [shape: f32[1,32], index: 1, kind: input, shape index: {}]   ;;  %s263_s2 = inlined_call_operand.vmem [shape: f32[1,32], index: 2, kind: input, shape index: {}]   ;;  %s264_s3 = inlined_call_operand.vmem [shape: f32[32,16], index: 3, kind: input, shape index: {}]   ;;  %s265_s4 = inlined_call_operand.vmem [shape: f32[1,16], index: 4, kind: input, shape index: {}]   ;;  %s266_s5 = inlined_call_operand.hbm [shape: f32[2,16], index: 5, kind: output, shape index: {}]  }
   0x1   :  { %v21_v0 = vld [vmem:[%s261_s0] sm:$0x3] }
   0x2   :  { %10 = vsyncpa [#allocation3], 0  ;;  %v23_v1 = vsel %vm22_vm0, %v21_v0, 0.0  ;;  %v56_v7 = vld [vmem:[%s264_s3 + $0x18] sm:$0xff]  ;;  %v201_v8 = vmov 0.0   ;;  %v55_v9 = vld [vmem:[%s264_s3 + $0x10] sm:$0xff] }
   0x3   :  { %24 = vadd.xlane.f32.xlu0 %v23_v1  ;;  %163 = vmatprep.subr.mxu0 %v201_v8  ;;  %vm202_vm1 = vmmov 0   ;;  %v54_v10 = vld [vmem:[%s264_s3 + $0x8] sm:$0xff]  ;;  %v53_v11 = vld [vmem:[%s264_s3] sm:$0xff]  ;;  %vm64_vm2 = vcmask 261120   ;;  %s203_s7 = smov [#allocation2]   ;;  %vm138_vm3 = vcmask 123904  }
   0x4   :  { %171 = vmatprep.mubr.msk.f32.mxu0 %vm202_vm1, %v201_v8  ;;  %164 = vmatpush3.msra.mxu0 %v56_v7  ;;  %v154_v16 = vld [vmem:[%s262_s1] ss:$0 sm:$0xff]  ;;  %s146_s8 = sshll.u32 %s203_s7, 4  ;;  %s147_s8 = int_to_ptr.vmem [resolvable:$true] %s146_s8 }
   0x5   :  { %165 = vmatprep.subr.mxu0 %v201_v8  ;;  %v155_v18 = vld [vmem:[%s263_s2] ss:$0 sm:$0xff]  ;;  %s179_s1 = scalar_lea.vmem %s147_s8, 32  ;;  %p184_p1 = scmp.lt.s32.totalorder %s147_s8, %s147_s8 }
   0x6   :  { %166 = vmatpush3.msra.mxu0 %v55_v9  ;;  %v156_v21 = vld [vmem:[%s265_s4] ss:$0 sm:$0xff]  ;;  %p180_p0 = scmp.ne.s32.totalorder %s147_s8, %s179_s1  ;;  %p185_p2 = scmp.lt.s32.totalorder %s179_s1, %s179_s1 }
   0x7   :  { %167 = vmatprep.subr.mxu0 %v201_v8 }
   0x8   :  { %168 = vmatpush3.msra.mxu0 %v54_v10  ;;  %p186_p3 = por %p185_p2, %p184_p1 }
   0x9   :  { %169 = vmatprep.subr.mxu0 %v201_v8 }
   0xa   :  { %170 = vmatpush3.msra.mxu0 %v53_v11  ;;  %p187_p4 = pnand %p186_p3, %p180_p0 }
  0x8c   :  { %v25_v2 = vpop.xlane.xlu0 %24 }
  0x8d   :  { %v27_v3 = vmul.f32 0.03125, %v25_v2 }
  0x8f   :  { %v28_v4 = vsub.f32 %v21_v0, %v27_v3 }
  0x91   :  { %v29_v5 = vmul.f32 %v28_v4, %v28_v4 }
  0x93   :  { %v30_v6 = vsel %vm22_vm0, %v29_v5, 0.0 }
  0x94   :  { %31 = vadd.xlane.f32.xlu0 %v30_v6 }
 0x11d   :  { %v32_v12 = vpop.xlane.xlu0 %31 }
 0x11e   :  { %v33_v13 = vmul.f32 0.03125, %v32_v12 }
 0x120   :  { %v34_v14 = vadd.f32 1e-05, %v33_v13 }
 0x122   :  { %177 = vrsqrt.f32 %v34_v14 }
 0x12f   :  { %v178_v15 = vpop.eup %177 }
 0x130   :  { %v36_v17 = vmul.f32 %v178_v15, %v28_v4 }
 0x132   :  { %v44_v19 = vmul.f32 %v154_v16, %v36_v17 }
 0x134   :  { %v52_v20 = vadd.f32 %v155_v18, %v44_v19 }
 0x136   :  { %172 = vmatmul.mubr.msk.f32.vlgmr.msra.gmra.mxu0 %vm64_vm2, %v52_v20 }
 0x1f6   :  { %v134_v22 = vpop.f32.mrf.mxu0 }
 0x1f7   :  { %v135_v23 = vadd.f32 %v156_v21, %v134_v22 }
 0x1f8   :  { %v173_v24 = vpop.f32.mrf.mxu0 }
 0x1f9   :  { %139 = vst.msk [vmem:[#allocation2] sm:$0x3] %vm138_vm3, %v135_v23 }
 0x1fa   :  { %190 = shalt.err (!%p187_p4)
}
 0x1fb   :  { %149 = dma.vmem_to_hbm [thread:$0]  %s147_s8, 32, %s266_s5, [#allocation3]  }
 0x1fc   :  { %199 = dma.done.wait [#allocation3], 32  }
 0x1fd   :  { %200 = vsyncadd [#allocation3], 4294967264 }
 0x1fe   :  { %153 = vsyncpa [#allocation3], 1 }

</bundles_post_ra>
